<compile_context>
chip_gen: v7x
topology: tpu7x:2x2x1
jax: 0.10.0
libtpu: 0.0.40
codegen_flags: <defaults>
</compile_context>

<pallas_src>
import jax
import jax.numpy as jnp
from jax.experimental import pallas as pl
from jax.experimental.pallas import tpu as pltpu


def _mlp66_kernel(dfi_ref, pack64_ref, pack128_ref, o_ref):
    # dfi_ref:    (B, 3)    columns are the scalar inputs D, F, I
    # pack64_ref: (200, 64) rows 0:3  = first-layer weights (w_D, w_F, w_I)
    #                        rows 3:6  = first-layer biases  (b_D, b_F, b_I)
    #                        row  6    = fc1 bias
    #                        row  7    = zero pad (8-row alignment)
    #                        rows 8:72, 72:136, 136:200 = fc1 weight blocks
    #                                    for the D / F / I slices of x_all
    # pack128_ref:(65, Np)  rows 0:64 = fc2 weight (padded to Np lanes)
    #                        row  64   = fc2 bias   (padded to Np lanes)
    dfi = dfi_ref[...]                                           # (B, 3)

    # --- Linear(1, 64) branches: K=1 contraction done on the VPU -----------
    def first_layer(col, w_row, b_row):
        x = dfi[:, col:col + 1]                                  # (B, 1)
        w = pack64_ref[w_row:w_row + 1, :]                       # (1, 64)
        b = pack64_ref[b_row:b_row + 1, :]                       # (1, 64)
        return jnp.maximum(x * w + b, 0.0)                       # (B, 64)

    h_d = first_layer(0, 0, 3)
    h_f = first_layer(1, 1, 4)
    h_i = first_layer(2, 2, 5)

    # --- fc1 on the non-zero slices of x_all (E/G/H slices are exactly 0) --
    b_mid = pack64_ref[6:7, :]                                   # (1, 64)
    wm_d = pack64_ref[8:72, :]                                   # (64, 64)
    wm_f = pack64_ref[72:136, :]                                 # (64, 64)
    wm_i = pack64_ref[136:200, :]                                # (64, 64)

    x = (jnp.dot(h_d, wm_d, preferred_element_type=jnp.float32)
         + jnp.dot(h_f, wm_f, preferred_element_type=jnp.float32)
         + jnp.dot(h_i, wm_i, preferred_element_type=jnp.float32)
         + b_mid)
    x = jnp.maximum(x, 0.0)                                      # (B, 64)

    # --- fc2, lane-dense (padded to a multiple of 128 output lanes) --------
    w_last = pack128_ref[0:64, :]                                # (64, Np)
    b_last = pack128_ref[64:65, :]                               # (1, Np)
    out = jnp.dot(x, w_last, preferred_element_type=jnp.float32) + b_last
    o_ref[...] = out.astype(o_ref.dtype)


def pack_params(params):
    """Pack all needed weights into two arrays. Call ONCE at setup so the
    per-call path does no repacking (weights stay resident as two operands)."""
    (wD, bD), (_wE, _bE), (wF, bF), (_wG, _bG), (_wH, _bH), (wI, bI), \
        (w1, b1), (w2, b2) = params

    # fc1 rows that multiply the non-zero slices of x_all ((in,out) layout).
    wm_d = w1[0:64, :]
    wm_f = w1[128:192, :]
    wm_i = w1[320:384, :]

    small = jnp.concatenate(
        [wD, wF, wI, bD, bF, bI, b1, jnp.zeros((1, 64), jnp.float32)], axis=0
    )                                                            # (8, 64)
    pack64 = jnp.concatenate([small, wm_d, wm_f, wm_i], axis=0)  # (200, 64)

    out_dim = w2.shape[1]
    out_pad = ((out_dim + 127) // 128) * 128                     # lane-dense
    w_last = jnp.zeros((64, out_pad), jnp.float32).at[:, :out_dim].set(w2)
    b_last = jnp.zeros((1, out_pad), jnp.float32).at[:, :out_dim].set(b2)
    pack128 = jnp.concatenate([w_last, b_last], axis=0)          # (65, out_pad)

    return pack64, pack128, out_dim, out_pad


def mlp_model66_forward(A, B, C, D, E, F, G, H, I, packed):
    """Pallas forward for MLPModel66. A,B,C unused; E,G,H branches are *0."""
    del A, B, C, E, G, H
    pack64, pack128, out_dim, out_pad = packed

    dfi = jnp.concatenate([D, F, I], axis=1).astype(jnp.float32)  # (B, 3)
    batch = dfi.shape[0]

    full = lambda shape: pl.BlockSpec(shape, lambda: tuple(0 for _ in shape))

    out_padded = pl.pallas_call(
        _mlp66_kernel,
        out_shape=jax.ShapeDtypeStruct((batch, out_pad), jnp.float32),
        grid=(),  # whole problem fits in one VMEM block at these shapes
        in_specs=[full(dfi.shape), full(pack64.shape), full(pack128.shape)],
        out_specs=full((batch, out_pad)),
    )(dfi, pack64, pack128)

    # TODO(synk): for very large batch, add a grid over the batch dim with
    # dimension_semantics=("parallel",) so v7x's two TensorCores split it.
    return out_padded[:, :out_dim]


def init_params(key, output_dim):
    """PyTorch-default-style init U(-1/sqrt(fan_in), 1/sqrt(fan_in)).
    Weights stored as (in_features, out_features); biases as (1, out)."""
    def linear(k, fan_in, fan_out):
        kw, kb = jax.random.split(k)
        bound = 1.0 / jnp.sqrt(jnp.float32(fan_in))
        w = jax.random.uniform(kw, (fan_in, fan_out), jnp.float32, -bound, bound)
        b = jax.random.uniform(kb, (1, fan_out), jnp.float32, -bound, bound)
        return w, b

    keys = jax.random.split(key, 8)
    fc_D1 = linear(keys[0], 1, 64)
    fc_E1 = linear(keys[1], 1, 64)
    fc_F1 = linear(keys[2], 1, 64)
    fc_G1 = linear(keys[3], 1, 64)
    fc_H1 = linear(keys[4], 1, 64)
    fc_I1 = linear(keys[5], 1, 64)
    fc1 = linear(keys[6], 384, 64)
    fc2 = linear(keys[7], 64, output_dim)
    return (fc_D1, fc_E1, fc_F1, fc_G1, fc_H1, fc_I1, fc1, fc2)


def _reference(D, E, F, G, H, I, params):
    (wD, bD), (wE, bE), (wF, bF), (wG, bG), (wH, bH), (wI, bI), \
        (w1, b1), (w2, b2) = params
    r = lambda x: jnp.maximum(x, 0.0)
    xD = r(D @ wD + bD); xE = r(E @ wE + bE); xF = r(F @ wF + bF)
    xG = r(G @ wG + bG); xH = r(H @ wH + bH); xI = r(I @ wI + bI)
    x_all = jnp.concatenate([xD, xE * 0, xF, xG * 0, xH * 0, xI], axis=1)
    x = r(x_all @ w1 + b1)
    return x @ w2 + b2


if __name__ == "__main__":
    key = jax.random.PRNGKey(0)
    batch = 8
    input_dim = 16      # only used for the unused A, B, C inputs
    output_dim = 8

    k_params, k_in = jax.random.split(key)
    params = init_params(k_params, output_dim)
    packed = pack_params(params)        # packed once; reused across calls

    # A, B, C are ignored by forward; D..I are the (batch, 1) scalar features.
    ks = jax.random.split(k_in, 9)
    A = jax.random.normal(ks[0], (batch, input_dim), jnp.float32)
    B = jax.random.normal(ks[1], (batch, input_dim), jnp.float32)
    C = jax.random.normal(ks[2], (batch, input_dim), jnp.float32)
    D = jax.random.normal(ks[3], (batch, 1), jnp.float32)
    E = jax.random.normal(ks[4], (batch, 1), jnp.float32)
    F = jax.random.normal(ks[5], (batch, 1), jnp.float32)
    G = jax.random.normal(ks[6], (batch, 1), jnp.float32)
    H = jax.random.normal(ks[7], (batch, 1), jnp.float32)
    I = jax.random.normal(ks[8], (batch, 1), jnp.float32)

    out = mlp_model66_forward(A, B, C, D, E, F, G, H, I, packed)
    out = jax.block_until_ready(out)

    ref = _reference(D, E, F, G, H, I, params)
    assert out.shape == (batch, output_dim)
    assert jnp.allclose(out, ref, atol=1e-5, rtol=1e-5), (
        f"max abs err {jnp.max(jnp.abs(out - ref))}")

    print("KERNEL_OK")
</pallas_src>

<mosaic_0001>
module attributes {stable_mosaic.version = 11 : i64} {
  func.func @_mlp66_kernel(%arg0: memref<8x3xf32, #tpu.memory_space<vmem>>, %arg1: memref<200x64xf32, #tpu.memory_space<vmem>>, %arg2: memref<65x128xf32, #tpu.memory_space<vmem>>, %arg3: memref<8x128xf32, #tpu.memory_space<vmem>>) attributes {dimension_semantics = [], scalar_prefetch = 0 : i64, scratch_operands = 0 : i64, tpu.core_type = #tpu.core_type<tc>} {
    %c0 = arith.constant 0 : index
    %c0_0 = arith.constant 0 : index
    %0 = vector.load %arg0[%c0, %c0_0] : memref<8x3xf32, #tpu.memory_space<vmem>>, vector<8x3xf32>
    %1 = vector.extract_strided_slice %0 {offsets = [0, 0], sizes = [8, 1], strides = [1, 1]} : vector<8x3xf32> to vector<8x1xf32>
    %c0_1 = arith.constant 0 : index
    %c0_2 = arith.constant 0 : index
    %2 = vector.load %arg1[%c0_1, %c0_2] : memref<200x64xf32, #tpu.memory_space<vmem>>, vector<1x64xf32>
    %c3 = arith.constant 3 : index
    %c0_3 = arith.constant 0 : index
    %3 = vector.load %arg1[%c3, %c0_3] : memref<200x64xf32, #tpu.memory_space<vmem>>, vector<1x64xf32>
    %4 = vector.broadcast %1 : vector<8x1xf32> to vector<8x64xf32>
    %5 = vector.broadcast %2 : vector<1x64xf32> to vector<8x64xf32>
    %6 = arith.mulf %4, %5 : vector<8x64xf32>
    %7 = vector.broadcast %3 : vector<1x64xf32> to vector<8x64xf32>
    %8 = arith.addf %6, %7 : vector<8x64xf32>
    %cst = arith.constant 0.000000e+00 : f32
    %9 = vector.broadcast %cst : f32 to vector<8x64xf32>
    %10 = arith.maximumf %8, %9 : vector<8x64xf32>
    %11 = vector.extract_strided_slice %0 {offsets = [0, 1], sizes = [8, 1], strides = [1, 1]} : vector<8x3xf32> to vector<8x1xf32>
    %c1 = arith.constant 1 : index
    %c0_4 = arith.constant 0 : index
    %12 = vector.load %arg1[%c1, %c0_4] : memref<200x64xf32, #tpu.memory_space<vmem>>, vector<1x64xf32>
    %c4 = arith.constant 4 : index
    %c0_5 = arith.constant 0 : index
    %13 = vector.load %arg1[%c4, %c0_5] : memref<200x64xf32, #tpu.memory_space<vmem>>, vector<1x64xf32>
    %14 = vector.broadcast %11 : vector<8x1xf32> to vector<8x64xf32>
    %15 = vector.broadcast %12 : vector<1x64xf32> to vector<8x64xf32>
    %16 = arith.mulf %14, %15 : vector<8x64xf32>
    %17 = vector.broadcast %13 : vector<1x64xf32> to vector<8x64xf32>
    %18 = arith.addf %16, %17 : vector<8x64xf32>
    %cst_6 = arith.constant 0.000000e+00 : f32
    %19 = vector.broadcast %cst_6 : f32 to vector<8x64xf32>
    %20 = arith.maximumf %18, %19 : vector<8x64xf32>
    %21 = vector.extract_strided_slice %0 {offsets = [0, 2], sizes = [8, 1], strides = [1, 1]} : vector<8x3xf32> to vector<8x1xf32>
    %c2 = arith.constant 2 : index
    %c0_7 = arith.constant 0 : index
    %22 = vector.load %arg1[%c2, %c0_7] : memref<200x64xf32, #tpu.memory_space<vmem>>, vector<1x64xf32>
    %c5 = arith.constant 5 : index
    %c0_8 = arith.constant 0 : index
    %23 = vector.load %arg1[%c5, %c0_8] : memref<200x64xf32, #tpu.memory_space<vmem>>, vector<1x64xf32>
    %24 = vector.broadcast %21 : vector<8x1xf32> to vector<8x64xf32>
    %25 = vector.broadcast %22 : vector<1x64xf32> to vector<8x64xf32>
    %26 = arith.mulf %24, %25 : vector<8x64xf32>
    %27 = vector.broadcast %23 : vector<1x64xf32> to vector<8x64xf32>
    %28 = arith.addf %26, %27 : vector<8x64xf32>
    %cst_9 = arith.constant 0.000000e+00 : f32
    %29 = vector.broadcast %cst_9 : f32 to vector<8x64xf32>
    %30 = arith.maximumf %28, %29 : vector<8x64xf32>
    %c6 = arith.constant 6 : index
    %c0_10 = arith.constant 0 : index
    %31 = vector.load %arg1[%c6, %c0_10] : memref<200x64xf32, #tpu.memory_space<vmem>>, vector<1x64xf32>
    %c8 = arith.constant 8 : index
    %c0_11 = arith.constant 0 : index
    %32 = vector.load %arg1[%c8, %c0_11] : memref<200x64xf32, #tpu.memory_space<vmem>>, vector<64x64xf32>
    %c72 = arith.constant 72 : index
    %c0_12 = arith.constant 0 : index
    %33 = vector.load %arg1[%c72, %c0_12] : memref<200x64xf32, #tpu.memory_space<vmem>>, vector<64x64xf32>
    %c136 = arith.constant 136 : index
    %c0_13 = arith.constant 0 : index
    %34 = vector.load %arg1[%c136, %c0_13] : memref<200x64xf32, #tpu.memory_space<vmem>>, vector<64x64xf32>
    %cst_14 = arith.constant dense<0.000000e+00> : vector<8x64xf32>
    %35 = tpu.matmul %10, %32, %cst_14 {dimension_numbers = #tpu.dot_dimension_numbers<[1], [0], [0], [1], [0, 0, 1, 1], [], []>} : vector<8x64xf32>, vector<64x64xf32>, vector<8x64xf32> -> vector<8x64xf32>
    %cst_15 = arith.constant dense<0.000000e+00> : vector<8x64xf32>
    %36 = tpu.matmul %20, %33, %cst_15 {dimension_numbers = #tpu.dot_dimension_numbers<[1], [0], [0], [1], [0, 0, 1, 1], [], []>} : vector<8x64xf32>, vector<64x64xf32>, vector<8x64xf32> -> vector<8x64xf32>
    %37 = arith.addf %35, %36 : vector<8x64xf32>
    %cst_16 = arith.constant dense<0.000000e+00> : vector<8x64xf32>
    %38 = tpu.matmul %30, %34, %cst_16 {dimension_numbers = #tpu.dot_dimension_numbers<[1], [0], [0], [1], [0, 0, 1, 1], [], []>} : vector<8x64xf32>, vector<64x64xf32>, vector<8x64xf32> -> vector<8x64xf32>
    %39 = arith.addf %37, %38 : vector<8x64xf32>
    %40 = vector.broadcast %31 : vector<1x64xf32> to vector<8x64xf32>
    %41 = arith.addf %39, %40 : vector<8x64xf32>
    %cst_17 = arith.constant 0.000000e+00 : f32
    %42 = vector.broadcast %cst_17 : f32 to vector<8x64xf32>
    %43 = arith.maximumf %41, %42 : vector<8x64xf32>
    %c0_18 = arith.constant 0 : index
    %c0_19 = arith.constant 0 : index
    %44 = vector.load %arg2[%c0_18, %c0_19] : memref<65x128xf32, #tpu.memory_space<vmem>>, vector<64x128xf32>
    %c64 = arith.constant 64 : index
    %c0_20 = arith.constant 0 : index
    %45 = vector.load %arg2[%c64, %c0_20] : memref<65x128xf32, #tpu.memory_space<vmem>>, vector<1x128xf32>
    %cst_21 = arith.constant dense<0.000000e+00> : vector<8x128xf32>
    %46 = tpu.matmul %43, %44, %cst_21 {dimension_numbers = #tpu.dot_dimension_numbers<[1], [0], [0], [1], [0, 0, 1, 1], [], []>} : vector<8x64xf32>, vector<64x128xf32>, vector<8x128xf32> -> vector<8x128xf32>
    %47 = vector.broadcast %45 : vector<1x128xf32> to vector<8x128xf32>
    %48 = arith.addf %46, %47 : vector<8x128xf32>
    %c0_22 = arith.constant 0 : index
    %c0_23 = arith.constant 0 : index
    %49 = vector.load %arg3[%c0_22, %c0_23] : memref<8x128xf32, #tpu.memory_space<vmem>>, vector<8x128xf32>
    tpu.vector_store %arg3[%c0_22, %c0_23], %48 {strides = array<i32>} : memref<8x128xf32, #tpu.memory_space<vmem>>, vector<8x128xf32>,
    return
  }
}

</mosaic_0001>

<bundles_post_ra>
// kernel: tpu_custom_call.1
= control target key start
LH: loop header
LB: loop body
LE: loop exit
PB: predicated region body
PF: predicated region fallthrough
CT: control target
= control target key end

     0   :  { %v628_v2 = vmov 1   ;;  %v629_v3 = vmov 2   ;;  %v630_v10 = vmov 0.0|0.0   ;;  %v631_v18 = vmov 0   ;;  %s814_s0 = inlined_call_operand.vmem [shape: f32[8,3], index: 0, kind: input, shape index: {}]   ;;  %s815_s1 = inlined_call_operand.vmem [shape: f32[200,64], index: 1, kind: input, shape index: {}]   ;;  %s816_s2 = inlined_call_operand.vmem [shape: f32[65,128], index: 2, kind: input, shape index: {}]   ;;  %s817_s3 = inlined_call_operand.hbm [shape: f32[8,128], index: 3, kind: output, shape index: {}]  }
   0x1   :  { %v15_v0 = vld [vmem:[%s814_s0] sm:$0xff]  ;;  %v77_v1 = vld [vmem:[%s815_s1 + $0x48] sm:$0xff]  ;;  %600 = vset.pattern.permute.xlu0 %v628_v2  ;;  %602 = vset.pattern.permute.xlu1 %v629_v3  ;;  %v78_v4 = vld [vmem:[%s815_s1 + $0x50] sm:$0xff]  ;;  %vm632_vm0 = vmmov 0   ;;  %v633_v21 = vmov 0.0  }
   0x2   :  { %v79_v5 = vld [vmem:[%s815_s1 + $0x58] sm:$0xff]  ;;  %v80_v6 = vld [vmem:[%s815_s1 + $0x60] sm:$0xff]  ;;  %37 = vperm.xlu0 %600, %v15_v0   ;;  %54 = vperm.xlu1 %602, %v15_v0   ;;  %v546_v7 = vpack.c.bf16 %v78_v4, %v77_v1  ;;  %v69_v8 = vld [vmem:[%s815_s1 + $0x8] sm:$0xff] }
   0x3   :  { %v70_v9 = vld [vmem:[%s815_s1 + $0x10] sm:$0xff]  ;;  %545 = vmatprep.subr.bf16.mxu0 %v630_v10  ;;  %557 = vmatprep.subr.bf16.mxu1 %v630_v10  ;;  %v549_v12 = vpack.c.bf16 %v80_v6, %v79_v5  ;;  %v71_v13 = vld [vmem:[%s815_s1 + $0x18] sm:$0xff]  ;;  %v72_v14 = vld [vmem:[%s815_s1 + $0x20] sm:$0xff] }
   0x4   :  { %v558_v11 = vpack.c.bf16 %v70_v9, %v69_v8  ;;  %547 = vmatpush3.bf16.msra.mxu0 %v546_v7  ;;  %v81_v15 = vld [vmem:[%s815_s1 + $0x68] sm:$0xff]  ;;  %v82_v16 = vld [vmem:[%s815_s1 + $0x70] sm:$0xff]  ;;  %v561_v17 = vpack.c.bf16 %v72_v14, %v71_v13  ;;  %485 = vmatprep.mubr.msk.f32.mxu0 %vm632_vm0, %v633_v21 }
   0x5   :  { %548 = vmatprep.subr.bf16.mxu0 %v630_v10  ;;  %v73_v19 = vld [vmem:[%s815_s1 + $0x28] sm:$0xff]  ;;  %v74_v20 = vld [vmem:[%s815_s1 + $0x30] sm:$0xff] }
   0x6   :  { %559 = vmatpush3.bf16.msra.mxu1 %v558_v11  ;;  %601 = vset.pattern.permute.xlu0 %v631_v18 }
   0x7   :  { %560 = vmatprep.subr.bf16.mxu1 %v630_v10  ;;  %20 = vperm.xlu0 %601, %v15_v0  }
   0x8   :  { %8 = vsyncpa [#allocation3], 0  ;;  %550 = vmatpush3.bf16.msra.mxu0 %v549_v12  ;;  %v552_v22 = vpack.c.bf16 %v82_v16, %v81_v15  ;;  %504 = vmatprep.mubr.msk.f32.mxu1 %vm632_vm0, %v633_v21  ;;  %v83_v23 = vld [vmem:[%s815_s1 + $0x78] sm:$0xff]  ;;  %v84_v24 = vld [vmem:[%s815_s1 + $0x80] sm:$0xff]  ;;  %v564_v25 = vpack.c.bf16 %v74_v20, %v73_v19  ;;  %vm93_vm1 = vcmask 523264   ;;  %s634_s10 = smov [#allocation2]  }
   0x9   :  { %551 = vmatprep.subr.bf16.mxu0 %v630_v10  ;;  %v75_v26 = vld [vmem:[%s815_s1 + $0x38] sm:$0xff]  ;;  %v76_v27 = vld [vmem:[%s815_s1 + $0x40] sm:$0xff]  ;;  %v555_v28 = vpack.c.bf16 %v84_v24, %v83_v23  ;;  %v85_v34 = vld [vmem:[%s815_s1 + $0x88] sm:$0xff]  ;;  %s413_s11 = sshll.u32 %s634_s10, 4  ;;  %s414_s11 = int_to_ptr.vmem [resolvable:$true] %s413_s11 }
   0xa   :  { %562 = vmatpush3.bf16.msra.mxu1 %v561_v17  ;;  %v567_v29 = vpack.c.bf16 %v76_v27, %v75_v26  ;;  %v423_v30 = vld [vmem:[%s815_s1 + $0x1] ss:$0 sm:$0xff]  ;;  %v424_v31 = vld [vmem:[%s815_s1 + $0x4] ss:$0 sm:$0xff]  ;;  %v86_v35 = vld [vmem:[%s815_s1 + $0x90] sm:$0xff]  ;;  %s604_s12 = scalar_lea.vmem %s414_s11, 128  ;;  %p609_p1 = scmp.lt.s32.totalorder %s414_s11, %s414_s11 }
   0xb   :  { %563 = vmatprep.subr.bf16.mxu1 %v630_v10  ;;  %603 = vset.pattern.permute.xlu0 %v629_v3  ;;  %v421_v37 = vld [vmem:[%s815_s1] ss:$0 sm:$0xff]  ;;  %v570_v38 = vpack.c.bf16 %v86_v35, %v85_v34  ;;  %v422_v40 = vld [vmem:[%s815_s1 + $0x3] ss:$0 sm:$0xff]  ;;  %v87_v42 = vld [vmem:[%s815_s1 + $0x98] sm:$0xff]  ;;  %p605_p0 = scmp.ne.s32.totalorder %s414_s11, %s604_s12  ;;  %p610_p2 = scmp.lt.s32.totalorder %s604_s12, %s604_s12 }
   0xc   :  { %553 = vmatpush3.bf16.msra.mxu0 %v552_v22  ;;  %v88_v43 = vld [vmem:[%s815_s1 + $0xa0] sm:$0xff]  ;;  %v89_v49 = vld [vmem:[%s815_s1 + $0xa8] sm:$0xff]  ;;  %v90_v50 = vld [vmem:[%s815_s1 + $0xb0] sm:$0xff] }
   0xd   :  { %554 = vmatprep.subr.bf16.mxu0 %v630_v10  ;;  %v573_v46 = vpack.c.bf16 %v88_v43, %v87_v42  ;;  %v425_v47 = vld [vmem:[%s815_s1 + $0x2] ss:$0 sm:$0xff]  ;;  %v426_v53 = vld [vmem:[%s815_s1 + $0x5] ss:$0 sm:$0xff]  ;;  %v576_v54 = vpack.c.bf16 %v90_v50, %v89_v49  ;;  %v91_v55 = vld [vmem:[%s815_s1 + $0xb8] sm:$0xff]  ;;  %p611_p3 = por %p610_p2, %p609_p1 }
   0xe   :  { %565 = vmatpush3.bf16.msra.mxu1 %v564_v25  ;;  %v92_v56 = vld [vmem:[%s815_s1 + $0xc0] sm:$0xff]  ;;  %v321_v61 = vld [vmem:[%s816_s2 + $0x8] sm:$0xff]  ;;  %v322_v63 = vld [vmem:[%s816_s2 + $0x10] sm:$0xff] }
   0xf   :  { %566 = vmatprep.subr.bf16.mxu1 %v630_v10  ;;  %v579_v58 = vpack.c.bf16 %v92_v56, %v91_v55  ;;  %v320_v60 = vld [vmem:[%s816_s2] sm:$0xff]  ;;  %v323_v0 = vld [vmem:[%s816_s2 + $0x18] sm:$0xff]  ;;  %v325_v3 = vld [vmem:[%s816_s2 + $0x28] sm:$0xff]  ;;  %p612_p4 = pnand %p611_p3, %p605_p0 }
  0x10   :  { %556 = vmatpush3.bf16.msra.mxu0 %v555_v28  ;;  %v582_v62 = vpack.c.bf16 %v321_v61, %v320_v60  ;;  %v585_v1 = vpack.c.bf16 %v323_v0, %v322_v63  ;;  %v324_v2 = vld [vmem:[%s816_s2 + $0x20] sm:$0xff]  ;;  %v326_v5 = vld [vmem:[%s816_s2 + $0x30] sm:$0xff]  ;;  %v327_v6 = vld [vmem:[%s816_s2 + $0x38] sm:$0xff] }
  0x11   :  { %569 = vmatprep.subr.bf16.mxu0 %v630_v10  ;;  %v588_v4 = vpack.c.bf16 %v325_v3, %v324_v2  ;;  %v591_v7 = vpack.c.bf16 %v327_v6, %v326_v5  ;;  %v430_v14 = vld [vmem:[%s815_s1 + $0x6] ss:$0 sm:$0xff]  ;;  %v431_v19 = vld [vmem:[%s816_s2 + $0x40] ss:$0 sm:$0xff] }
  0x12   :  { %568 = vmatpush3.bf16.msra.mxu1 %v567_v29 }
  0x13   :  { %581 = vmatprep.subr.bf16.mxu1 %v630_v10 }
  0x81   :  { %v38_v32 = vpop.permute.xlu0 %37  ;;  %v55_v48 = vpop.permute.xlu1 %54 }
  0x82   :  { %v44_v33 = vmul.f32 %v423_v30, %v38_v32  ;;  %v61_v52 = vmul.f32 %v425_v47, %v55_v48 }
  0x84   :  { %v49_v36 = vadd.f32 %v424_v31, %v44_v33  ;;  %v66_v57 = vadd.f32 %v426_v53, %v61_v52 }
  0x86   :  { %v50_v39 = vmax.f32 %v49_v36, 0.0  ;;  %v21_v41 = vpop.permute.xlu0 %20  ;;  %v67_v59 = vmax.f32 %v66_v57, 0.0 }
  0x87   :  { %v27_v44 = vmul.f32 %v421_v37, %v21_v41 }
  0x88   :  { %486 = vmatmul.mubr.msk.f32.vlgmr.msra.gmra.mrb[0].mxu0 %vm93_vm1, %v50_v39 }
  0x89   :  { %v32_v45 = vadd.f32 %v422_v40, %v27_v44  ;;  %571 = vmatpush3.bf16.msra.mxu0 %v570_v38  ;;  %523 = vmatprep.mubr.msk.f32.mxu0 %vm632_vm0, %v633_v21 }
  0x8a   :  { %572 = vmatprep.subr.bf16.mxu0 %v630_v10 }
  0x8b   :  { %v33_v51 = vmax.f32 %v32_v45, 0.0 }
  0x8d   :  { %574 = vmatpush3.bf16.msra.mxu0 %v573_v46  ;;  %505 = vmatmul.mubr.msk.f32.vlgmr.msra.gmra.mrb[0].mxu1 %vm93_vm1, %v33_v51 }
  0x8e   :  { %575 = vmatprep.subr.bf16.mxu0 %v630_v10  ;;  %542 = vmatprep.mubr.msk.f32.mxu1 %vm632_vm0, %v633_v21 }
  0x8f   :  { %583 = vmatpush3.bf16.msra.mxu1 %v582_v62 }
  0x90   :  { %584 = vmatprep.subr.bf16.mxu1 %v630_v10 }
  0x91   :  { %577 = vmatpush3.bf16.msra.mxu0 %v576_v54 }
  0x92   :  { %578 = vmatprep.subr.bf16.mxu0 %v630_v10 }
  0x93   :  { %586 = vmatpush3.bf16.msra.mxu1 %v585_v1 }
  0x94   :  { %587 = vmatprep.subr.bf16.mxu1 %v630_v10 }
  0x95   :  { %580 = vmatpush3.bf16.msra.mxu0 %v579_v58 }
  0x97   :  { %589 = vmatpush3.bf16.msra.mxu1 %v588_v4 }
  0x98   :  { %524 = vmatmul.mubr.msk.f32.vlgmr.msra.gmra.mrb[2].mxu0 %vm93_vm1, %v67_v59  ;;  %590 = vmatprep.subr.bf16.mxu1 %v630_v10 }
  0x9b   :  { %592 = vmatpush3.bf16.msra.mxu1 %v591_v7 }
 0x15b   :  { %v163_v8 = vpop.f32.mrb[0].mxu0 }
 0x15c   :  { %v487_v9 = vpop.f32.mrb[1].mxu0 }
 0x160   :  { %v236_v11 = vpop.f32.mrb[0].mxu1 }
 0x161   :  { %v237_v12 = vadd.f32 %v236_v11, %v163_v8  ;;  %v506_v13 = vpop.f32.mrb[1].mxu1 }
 0x16b   :  { %v309_v10 = vpop.f32.mrb[2].mxu0 }
 0x16c   :  { %v313_v15 = vadd.f32 %v309_v10, %v237_v12  ;;  %v525_v16 = vpop.f32.mrb[3].mxu0 }
 0x16e   :  { %v318_v17 = vadd.f32 %v430_v14, %v313_v15 }
 0x170   :  { %v319_v18 = vmax.f32 %v318_v17, 0.0 }
 0x172   :  { %543 = vmatmul.mubr.msk.f32.vlgmr.msra.gmra.mrb[2].mxu1 %vm93_vm1, %v319_v18 }
 0x245   :  { %v402_v20 = vpop.f32.mrb[2].mxu1 }
 0x246   :  { %v403_v21 = vadd.f32 %v431_v19, %v402_v20  ;;  %v544_v22 = vpop.f32.mrb[3].mxu1 }
 0x248   :  { %406 = vst [vmem:[#allocation2] sm:$0xff] %v403_v21 }
 0x249   :  { %615 = shalt.err (!%p612_p4)
}
 0x24a   :  { %s616_s14 = scalar_lea.hbm %s817_s3, 128 }
 0x24b   :  { %p617_p5 = scmp.ne.s32.totalorder %s817_s3, %s616_s14  ;;  %p620_p6 = scmp.lt.u32.totalorder %s616_s14, %s817_s3 }
 0x24d   :  { %p622_p7 = pnand %p620_p6, %p617_p5 }
 0x24f   :  { %625 = shalt.err (!%p622_p7)
}
 0x250   :  { %416 = dma.vmem_to_hbm [thread:$0]  %s414_s11, 128, %s817_s3, [#allocation3]  }
 0x251   :  { %626 = dma.done.wait [#allocation3], 128  }
 0x252   :  { %627 = vsyncadd [#allocation3], 4294967168 }
 0x253   :  { %420 = vsyncpa [#allocation3], 1 }

</bundles_post_ra>
